<compile_context>
chip_gen: v7x
topology: tpu7x:2x2x1
jax: 0.10.0
libtpu: 0.0.40
codegen_flags: <defaults>
</compile_context>

<pallas_src>
import functools

import jax
import jax.numpy as jnp
from jax.experimental import pallas as pl
from jax.experimental.pallas import tpu as pltpu

NEG_SLOPE = 0.01  # torch.nn.LeakyReLU default negative_slope


def _leaky_relu(x):
    return jnp.where(x >= 0, x, NEG_SLOPE * x)


def dnn_kernel(x_ref, w_in_ref, b_in_ref, w_hid_ref, b_hid_ref,
               w_out_ref, b_out_ref, o_ref, *, num_layer):
    """Whole MLP forward for one batch tile; batch on the lane axis.

    x_ref:     (D, TB)   bf16       (batch on lanes)
    w_in_ref:  (H, D)    bf16       b_in_ref:  (H, 1)    f32
    w_hid_ref: (L, H, H) bf16       b_hid_ref: (L, H, 1) f32
    w_out_ref: (1, H)    bf16       b_out_ref: (1, 1)    f32
    o_ref:     (1, TB)   f32
    """
    cdt = w_in_ref.dtype
    # Input layer: (H, D) @ (D, TB) -> (H, TB), f32 accumulate on MXU.
    h = jnp.dot(w_in_ref[...], x_ref[...], preferred_element_type=jnp.float32)
    h = _leaky_relu(h + b_in_ref[...])          # bias + activation in f32 (VPU)
    # TODO(synk): Dropout(p=dpo) not implemented; module defaults to p=0.0
    # (identity at eval).
    for l in range(num_layer):  # static unroll over hidden layers
        h = jnp.dot(w_hid_ref[l], h.astype(cdt),
                    preferred_element_type=jnp.float32)
        h = _leaky_relu(h + b_hid_ref[l])
    # Output layer: (1, H) @ (H, TB) -> (1, TB); lane-dense store.
    o_ref[...] = (jnp.dot(w_out_ref[...], h.astype(cdt),
                          preferred_element_type=jnp.float32)
                  + b_out_ref[...])


def _default_block_b(B):
    if B <= 128:
        return B                     # single tile equal to the full dim
    # Lane-aligned tile; large enough to amortize per-step overhead, small
    # enough that the grid has >= 2 steps (feeds both v7x TensorCores).
    half = ((B + 1) // 2) // 128 * 128
    return int(min(4096, max(128, half)))


def dnn_forward(x, params, *, num_layer, block_b=None,
                compute_dtype=jnp.bfloat16):
    B, D = x.shape
    H = params["w_in"].shape[0]
    L = max(num_layer, 1)            # keep a non-degenerate block even if 0 layers
    if block_b is None:
        block_b = _default_block_b(B)
    grid = (pl.cdiv(B, block_b),)

    # Layout plumbing outside the kernel: batch -> lanes, weights stay
    # torch-native (out, in).  Matmul operands in bf16, biases stay f32.
    xt = x.T.astype(compute_dtype)                       # (D, B)
    w_in = params["w_in"].astype(compute_dtype)          # (H, D)
    w_out = params["w_out"].astype(compute_dtype)        # (1, H)
    b_in = params["b_in"].astype(jnp.float32)            # (H, 1)
    b_out = params["b_out"].astype(jnp.float32)          # (1, 1)
    if num_layer > 0:
        w_hid = params["w_hid"].astype(compute_dtype)    # (L, H, H)
        b_hid = params["b_hid"].astype(jnp.float32)      # (L, H, 1)
    else:
        w_hid = jnp.zeros((1, H, H), compute_dtype)      # dummy, never read
        b_hid = jnp.zeros((1, H, 1), jnp.float32)

    flops = 2 * B * (D * H + num_layer * H * H + H)
    weight_bytes = (w_in.size * w_in.dtype.itemsize
                    + w_hid.size * w_hid.dtype.itemsize
                    + w_out.size * w_out.dtype.itemsize
                    + 4 * (b_in.size + b_hid.size + b_out.size))
    bytes_accessed = int(B * D * xt.dtype.itemsize + B * 4 + weight_bytes)

    kernel = functools.partial(dnn_kernel, num_layer=num_layer)
    out_t = pl.pallas_call(
        kernel,
        out_shape=jax.ShapeDtypeStruct((1, B), jnp.float32),
        grid=grid,
        in_specs=[
            pl.BlockSpec((D, block_b), lambda i: (0, i)),      # x tile (lanes = batch)
            pl.BlockSpec((H, D), lambda i: (0, 0)),            # W_in
            pl.BlockSpec((H, 1), lambda i: (0, 0)),            # b_in
            pl.BlockSpec((L, H, H), lambda i: (0, 0, 0)),      # hidden W's
            pl.BlockSpec((L, H, 1), lambda i: (0, 0, 0)),      # hidden b's
            pl.BlockSpec((1, H), lambda i: (0, 0)),            # W_out
            pl.BlockSpec((1, 1), lambda i: (0, 0)),            # b_out
        ],
        out_specs=pl.BlockSpec((1, block_b), lambda i: (0, i)),
        compiler_params=pltpu.CompilerParams(
            dimension_semantics=("parallel",)),
        cost_estimate=pl.CostEstimate(flops=int(flops), transcendentals=0,
                                      bytes_accessed=bytes_accessed),
    )(xt, w_in, b_in, w_hid, b_hid, w_out, b_out)

    return out_t.T                                        # (B, 1) f32


def init_params(key, num_layer, num_hidden, input_dim):
    """Deterministic synthetic parameters (torch-native (out, in) layout)."""
    ks = jax.random.split(key, 6)
    s_in = 1.0 / jnp.sqrt(input_dim)
    s_h = 1.0 / jnp.sqrt(num_hidden)
    return dict(
        w_in=jax.random.normal(ks[0], (num_hidden, input_dim), jnp.float32) * s_in,
        b_in=jax.random.normal(ks[1], (num_hidden, 1), jnp.float32) * s_in,
        w_hid=jax.random.normal(ks[2], (max(num_layer, 1), num_hidden, num_hidden),
                                jnp.float32) * s_h,
        b_hid=jax.random.normal(ks[3], (max(num_layer, 1), num_hidden, 1),
                                jnp.float32) * s_h,
        w_out=jax.random.normal(ks[4], (1, num_hidden), jnp.float32) * s_h,
        b_out=jax.random.normal(ks[5], (1, 1), jnp.float32) * s_h,
    )


def dnn_reference(x, params, num_layer, compute_dtype=jnp.bfloat16):
    """Pure-JAX reference with the same bf16-operand / f32-accumulate recipe."""
    cdt = compute_dtype
    h = jnp.dot(x.astype(cdt), params["w_in"].astype(cdt).T,
                preferred_element_type=jnp.float32) + params["b_in"][:, 0]
    h = _leaky_relu(h)
    for l in range(num_layer):
        h = jnp.dot(h.astype(cdt), params["w_hid"][l].astype(cdt).T,
                    preferred_element_type=jnp.float32) + params["b_hid"][l, :, 0]
        h = _leaky_relu(h)
    return (jnp.dot(h.astype(cdt), params["w_out"].astype(cdt).T,
                    preferred_element_type=jnp.float32) + params["b_out"][:, 0])


if __name__ == "__main__":
    num_layer, num_hidden, input_dim = 2, 32, 16
    batch = 256   # small, but gives a 2-step parallel grid with block_b=128

    key = jax.random.PRNGKey(0)
    k_x, k_p = jax.random.split(key)
    x = jax.random.normal(k_x, (batch, input_dim), jnp.float32)
    params = init_params(k_p, num_layer, num_hidden, input_dim)

    out = dnn_forward(x, params, num_layer=num_layer)
    out = jax.block_until_ready(out)

    ref = dnn_reference(x, params, num_layer)
    assert out.shape == (batch, 1)
    assert jnp.allclose(out, ref, atol=5e-3, rtol=5e-3), "mismatch vs JAX reference"
    print("KERNEL_OK")
</pallas_src>

<mosaic_0001>
module attributes {stable_mosaic.version = 11 : i64} {
  func.func @dnn_kernel(%arg0: i32, %arg1: memref<16x128xbf16, #tpu.memory_space<vmem>>, %arg2: memref<32x16xbf16, #tpu.memory_space<vmem>>, %arg3: memref<32x1xf32, #tpu.memory_space<vmem>>, %arg4: memref<2x32x32xbf16, #tpu.memory_space<vmem>>, %arg5: memref<2x32x1xf32, #tpu.memory_space<vmem>>, %arg6: memref<1x32xbf16, #tpu.memory_space<vmem>>, %arg7: memref<1x1xf32, #tpu.memory_space<vmem>>, %arg8: memref<1x128xf32, #tpu.memory_space<vmem>>) attributes {dimension_semantics = [#tpu.dimension_semantics<parallel>], iteration_bounds = array<i64: 2>, scalar_prefetch = 0 : i64, scratch_operands = 0 : i64, tpu.core_type = #tpu.core_type<tc>, window_params = [{transform_indices = @transform_0, window_bounds = array<i64: 16, 128>}, {pipeline_mode = #tpu.pipeline_mode<synchronous>, transform_indices = @transform_1, window_bounds = array<i64: 32, 16>}, {pipeline_mode = #tpu.pipeline_mode<synchronous>, transform_indices = @transform_2, window_bounds = array<i64: 32, 1>}, {pipeline_mode = #tpu.pipeline_mode<synchronous>, transform_indices = @transform_3, window_bounds = array<i64: 2, 32, 32>}, {pipeline_mode = #tpu.pipeline_mode<synchronous>, transform_indices = @transform_4, window_bounds = array<i64: 2, 32, 1>}, {pipeline_mode = #tpu.pipeline_mode<synchronous>, transform_indices = @transform_5, window_bounds = array<i64: 1, 32>}, {pipeline_mode = #tpu.pipeline_mode<synchronous>, transform_indices = @transform_6, window_bounds = array<i64: 1, 1>}, {transform_indices = @transform_7, window_bounds = array<i64: 1, 128>}]} {
    %c0 = arith.constant 0 : index
    %c0_0 = arith.constant 0 : index
    %0 = vector.load %arg2[%c0, %c0_0] : memref<32x16xbf16, #tpu.memory_space<vmem>>, vector<32x16xbf16>
    %c0_1 = arith.constant 0 : index
    %c0_2 = arith.constant 0 : index
    %1 = vector.load %arg1[%c0_1, %c0_2] : memref<16x128xbf16, #tpu.memory_space<vmem>>, vector<16x128xbf16>
    %cst = arith.constant dense<0.000000e+00> : vector<32x128xf32>
    %2 = tpu.matmul %0, %1, %cst {dimension_numbers = #tpu.dot_dimension_numbers<[1], [0], [0], [1], [0, 0, 1, 1], [], []>} : vector<32x16xbf16>, vector<16x128xbf16>, vector<32x128xf32> -> vector<32x128xf32>
    %c0_3 = arith.constant 0 : index
    %c0_4 = arith.constant 0 : index
    %3 = vector.load %arg3[%c0_3, %c0_4] : memref<32x1xf32, #tpu.memory_space<vmem>>, vector<32x1xf32>
    %4 = vector.broadcast %3 : vector<32x1xf32> to vector<32x128xf32>
    %5 = arith.addf %2, %4 : vector<32x128xf32>
    %cst_5 = arith.constant 0.000000e+00 : f32
    %6 = vector.broadcast %cst_5 : f32 to vector<32x128xf32>
    %7 = arith.cmpf oge, %5, %6 : vector<32x128xf32>
    %cst_6 = arith.constant 0.00999999977 : f32
    %8 = vector.broadcast %cst_6 : f32 to vector<32x128xf32>
    %9 = arith.mulf %8, %5 : vector<32x128xf32>
    %10 = arith.select %7, %5, %9 : vector<32x128xi1>, vector<32x128xf32>
    %c0_7 = arith.constant 0 : index
    %c0_8 = arith.constant 0 : index
    %c0_9 = arith.constant 0 : index
    %11 = vector.load %arg4[%c0_7, %c0_8, %c0_9] : memref<2x32x32xbf16, #tpu.memory_space<vmem>>, vector<1x32x32xbf16>
    %12 = vector.shape_cast %11 : vector<1x32x32xbf16> to vector<32x32xbf16>
    %13 = arith.truncf %10 : vector<32x128xf32> to vector<32x128xbf16>
    %cst_10 = arith.constant dense<0.000000e+00> : vector<32x128xf32>
    %14 = tpu.matmul %12, %13, %cst_10 {dimension_numbers = #tpu.dot_dimension_numbers<[1], [0], [0], [1], [0, 0, 1, 1], [], []>} : vector<32x32xbf16>, vector<32x128xbf16>, vector<32x128xf32> -> vector<32x128xf32>
    %c0_11 = arith.constant 0 : index
    %c0_12 = arith.constant 0 : index
    %c0_13 = arith.constant 0 : index
    %15 = vector.load %arg5[%c0_11, %c0_12, %c0_13] : memref<2x32x1xf32, #tpu.memory_space<vmem>>, vector<1x32x1xf32>
    %16 = vector.shape_cast %15 : vector<1x32x1xf32> to vector<32x1xf32>
    %17 = vector.broadcast %16 : vector<32x1xf32> to vector<32x128xf32>
    %18 = arith.addf %14, %17 : vector<32x128xf32>
    %cst_14 = arith.constant 0.000000e+00 : f32
    %19 = vector.broadcast %cst_14 : f32 to vector<32x128xf32>
    %20 = arith.cmpf oge, %18, %19 : vector<32x128xf32>
    %cst_15 = arith.constant 0.00999999977 : f32
    %21 = vector.broadcast %cst_15 : f32 to vector<32x128xf32>
    %22 = arith.mulf %21, %18 : vector<32x128xf32>
    %23 = arith.select %20, %18, %22 : vector<32x128xi1>, vector<32x128xf32>
    %c1 = arith.constant 1 : index
    %c0_16 = arith.constant 0 : index
    %c0_17 = arith.constant 0 : index
    %24 = vector.load %arg4[%c1, %c0_16, %c0_17] : memref<2x32x32xbf16, #tpu.memory_space<vmem>>, vector<1x32x32xbf16>
    %25 = vector.shape_cast %24 : vector<1x32x32xbf16> to vector<32x32xbf16>
    %26 = arith.truncf %23 : vector<32x128xf32> to vector<32x128xbf16>
    %cst_18 = arith.constant dense<0.000000e+00> : vector<32x128xf32>
    %27 = tpu.matmul %25, %26, %cst_18 {dimension_numbers = #tpu.dot_dimension_numbers<[1], [0], [0], [1], [0, 0, 1, 1], [], []>} : vector<32x32xbf16>, vector<32x128xbf16>, vector<32x128xf32> -> vector<32x128xf32>
    %c1_19 = arith.constant 1 : index
    %c0_20 = arith.constant 0 : index
    %c0_21 = arith.constant 0 : index
    %28 = vector.load %arg5[%c1_19, %c0_20, %c0_21] : memref<2x32x1xf32, #tpu.memory_space<vmem>>, vector<1x32x1xf32>
    %29 = vector.shape_cast %28 : vector<1x32x1xf32> to vector<32x1xf32>
    %30 = vector.broadcast %29 : vector<32x1xf32> to vector<32x128xf32>
    %31 = arith.addf %27, %30 : vector<32x128xf32>
    %cst_22 = arith.constant 0.000000e+00 : f32
    %32 = vector.broadcast %cst_22 : f32 to vector<32x128xf32>
    %33 = arith.cmpf oge, %31, %32 : vector<32x128xf32>
    %cst_23 = arith.constant 0.00999999977 : f32
    %34 = vector.broadcast %cst_23 : f32 to vector<32x128xf32>
    %35 = arith.mulf %34, %31 : vector<32x128xf32>
    %36 = arith.select %33, %31, %35 : vector<32x128xi1>, vector<32x128xf32>
    %c0_24 = arith.constant 0 : index
    %c0_25 = arith.constant 0 : index
    %37 = vector.load %arg6[%c0_24, %c0_25] : memref<1x32xbf16, #tpu.memory_space<vmem>>, vector<1x32xbf16>
    %38 = arith.truncf %36 : vector<32x128xf32> to vector<32x128xbf16>
    %cst_26 = arith.constant dense<0.000000e+00> : vector<1x128xf32>
    %39 = tpu.matmul %37, %38, %cst_26 {dimension_numbers = #tpu.dot_dimension_numbers<[1], [0], [0], [1], [0, 0, 1, 1], [], []>} : vector<1x32xbf16>, vector<32x128xbf16>, vector<1x128xf32> -> vector<1x128xf32>
    %c0_27 = arith.constant 0 : index
    %c0_28 = arith.constant 0 : index
    %40 = vector.load %arg7[%c0_27, %c0_28] : memref<1x1xf32, #tpu.memory_space<vmem>>, vector<1x1xf32>
    %41 = vector.broadcast %40 : vector<1x1xf32> to vector<1x128xf32>
    %42 = arith.addf %39, %41 : vector<1x128xf32>
    %c0_29 = arith.constant 0 : index
    %c0_30 = arith.constant 0 : index
    %43 = vector.load %arg8[%c0_29, %c0_30] : memref<1x128xf32, #tpu.memory_space<vmem>>, vector<1x128xf32>
    tpu.vector_store %arg8[%c0_29, %c0_30], %42 {strides = array<i32>} : memref<1x128xf32, #tpu.memory_space<vmem>>, vector<1x128xf32>,
    return
  }
  func.func @transform_0(%arg0: i32) -> (i32, i32) {
    %c0_i32 = arith.constant 0 : i32
    %c0_i32_0 = arith.constant 0 : i32
    return %c0_i32, %arg0 : i32, i32
  }
  func.func @transform_1(%arg0: i32) -> (i32, i32) {
    %c0_i32 = arith.constant 0 : i32
    %c0_i32_0 = arith.constant 0 : i32
    %c0_i32_1 = arith.constant 0 : i32
    return %c0_i32, %c0_i32_0 : i32, i32
  }
  func.func @transform_2(%arg0: i32) -> (i32, i32) {
    %c0_i32 = arith.constant 0 : i32
    %c0_i32_0 = arith.constant 0 : i32
    %c0_i32_1 = arith.constant 0 : i32
    return %c0_i32, %c0_i32_0 : i32, i32
  }
  func.func @transform_3(%arg0: i32) -> (i32, i32, i32) {
    %c0_i32 = arith.constant 0 : i32
    %c0_i32_0 = arith.constant 0 : i32
    %c0_i32_1 = arith.constant 0 : i32
    %c0_i32_2 = arith.constant 0 : i32
    return %c0_i32, %c0_i32_0, %c0_i32_1 : i32, i32, i32
  }
  func.func @transform_4(%arg0: i32) -> (i32, i32, i32) {
    %c0_i32 = arith.constant 0 : i32
    %c0_i32_0 = arith.constant 0 : i32
    %c0_i32_1 = arith.constant 0 : i32
    %c0_i32_2 = arith.constant 0 : i32
    return %c0_i32, %c0_i32_0, %c0_i32_1 : i32, i32, i32
  }
  func.func @transform_5(%arg0: i32) -> (i32, i32) {
    %c0_i32 = arith.constant 0 : i32
    %c0_i32_0 = arith.constant 0 : i32
    %c0_i32_1 = arith.constant 0 : i32
    return %c0_i32, %c0_i32_0 : i32, i32
  }
  func.func @transform_6(%arg0: i32) -> (i32, i32) {
    %c0_i32 = arith.constant 0 : i32
    %c0_i32_0 = arith.constant 0 : i32
    %c0_i32_1 = arith.constant 0 : i32
    return %c0_i32, %c0_i32_0 : i32, i32
  }
  func.func @transform_7(%arg0: i32) -> (i32, i32) {
    %c0_i32 = arith.constant 0 : i32
    %c0_i32_0 = arith.constant 0 : i32
    return %c0_i32, %arg0 : i32, i32
  }
}

</mosaic_0001>

<bundles_post_ra>
// kernel: tpu_custom_call.1
= control target key start
LH: loop header
LB: loop body
LE: loop exit
PB: predicated region body
PF: predicated region fallthrough
CT: control target
= control target key end

     0   :  { %s1198_s0 = inlined_call_operand.vmem [shape: bf16[16,256], index: 0, kind: input, shape index: {}]   ;;  %s1199_s1 = inlined_call_operand.vmem [shape: bf16[32,16], index: 1, kind: input, shape index: {}]   ;;  %s1200_s2 = inlined_call_operand.vmem [shape: f32[32,1], index: 2, kind: input, shape index: {}]   ;;  %s1201_s3 = inlined_call_operand.vmem [shape: bf16[2,32,32], index: 3, kind: input, shape index: {}]   ;;  %s1202_s4 = inlined_call_operand.vmem [shape: f32[2,32,1], index: 4, kind: input, shape index: {}]   ;;  %s1203_s5 = inlined_call_operand.vmem [shape: bf16[1,32], index: 5, kind: input, shape index: {}]   ;;  %s1204_s6 = inlined_call_operand.<no memory space> [shape: f32[1,1], index: 6, kind: input, shape index: {}]   ;;  %s1205_s7 = inlined_call_operand.hbm [shape: f32[1,256], index: 7, kind: output, shape index: {}]  }
   0x1   :  { %v12_v0 = vstv %s1204_s6 }
   0x2   :  { %13 = vst [vmem:[#allocation2] sm:$0x1] %v12_v0 }
   0x3   :  { %14 = vsyncpa [#allocation5], 0 }
   0x4   :  { %16 = vsyncpa [#allocation5 + $0x1], 0  ;;  %s1024_s26 = smov 0   ;;  %s1026_s27 = smov 0  }
   0x5   :  { %s1028_s28 = smov 0   ;;  %s1030_s29 = smov 0  }
   0x6 LB: > { %s785_s6 = sadd.s32 4294967295, %s975_s29   ;;  %s786_s30 = sadd.s32 4294967294, %s975_s29   ;;  %s975_s29 = sphi %s1030_s29, %s1211_s29   ;;  %s971_s28 = sphi %s1028_s28, %s1210_s28   ;;  %s967_s27 = sphi %s1026_s27, %s1209_s27   ;;  %s963_s26 = sphi %s1024_s26, %s1208_s26  }
   0x7   : > { %s1047_s8 = sadd.s32 1, %s975_s29   ;;  %s29_s9 = sadd.s32 1, %s971_s28 }
   0x8   : > { %s26_s10 = ssub.s32 %s975_s29, %s1047_s8  ;;  %p36_p0 = scmp.ne.s32.totalorder %s971_s28, %s967_s27 }
   0x9   : > { %p27_p1 = scmp.eq.s32.totalorder %s26_s10, 0  ;;  %p37_p2 = scmp.eq.s32.totalorder %s975_s29, 0 }
   0xa   : > { %p192_p3 = scmp.eq.s32.totalorder %s785_s6, 1  ;;  %p197_p4 = scmp.ne.s32.totalorder %s967_s27, %s963_s26 }
   0xb   : > { %s1060_s11 = scalar_select %p27_p1, %s971_s28, %s29_s9  }
   0xc   : > { %p38_p5 = por %p37_p2, %p36_p0  ;;  %p1062_p6 = por %p192_p3, %p36_p0 }
   0xd   : > { %p198_p7 = scmp.eq.s32.totalorder %s786_s30, 1  ;;  %p788_p9 = scmp.ge.s32.totalorder %s975_s29, 2 }
   0xf   : > { %p1066_p8 = por %p198_p7, %p197_p4  ;;  %232 = sbr.rel (%p788_p9) target bundleno = 29 (0x1d), region = 40 }
  0x16   : > { %235 = sbr.rel (!%p38_p5) target bundleno = 29 (0x1d), region = 44  ;;  %s237_s14 = sand.u32 (%p38_p5), 1, %s971_s28  }
  0x17   : > { %s790_s15 = sshll.u32 (%p38_p5), %s975_s29, 2  ;;  %s789_s16 = sshll.u32 (%p38_p5), %s237_s14, 3 }
  0x18   : > { %s241_s19 = scalar_lea.vmem (%p38_p5), %s1198_s0, %s790_s15  ;;  %s239_s20 = scalar_lea.vmem (%p38_p5), [#allocation3], %s789_s16 }
  0x19   : > { %v257_v1 = vld [vmem:[%s241_s19] sm:$0xf] (%p38_p5)  ;;  %v259_v2 = vld [vmem:[%s241_s19 + $0x8] sm:$0xf] (%p38_p5) }
  0x1a   : > { %258 = vst [vmem:[%s239_s20] sm:$0xf] (%p38_p5), %v257_v1  ;;  %260 = vst [vmem:[%s239_s20 + $0x4] sm:$0xf] (%p38_p5), %v259_v2 }
  0x1d PF: > { %p791_p10 = scmp.ge.s32.totalorder %s975_s29, 1  ;;  %p286_p11 = scmp.lt.s32.totalorder %s975_s29, 3 }
  0x1f   : > { %p287_p12 = pnand %p791_p10, %p286_p11 }
  0x20   : > { %s1081_s21 = sand.u32 (!%p287_p12), 1, %s967_s27   ;;  %v907_v3 = vld [vmem:[%s1199_s1] sm:$0xff] (!%p287_p12)   ;;  %vm370_vm0 = vcmask (!%p287_p12), 130048   ;;  %v977_v6 = vmov (!%p287_p12), 0   ;;  %v332_v7 = vld [vmem:[%s1200_s2 + $0x10] sm:$0xff] (!%p287_p12)  ;;  %v908_v8 = vld [vmem:[%s1199_s1 + $0x8] sm:$0xff] (!%p287_p12)  }
  0x21   : > { %290 = sbr.rel (%p287_p12) target bundleno = 957 (0x3bd), region = 85  ;;  %s792_s24 = sshll.u32 (!%p287_p12), %s1081_s21, 3  ;;  %834 = vmatprep.mubr.msk.bf16.mxu0 (!%p287_p12), %vm370_vm0, %v907_v3  ;;  %v330_v4 = vld [vmem:[%s1200_s2] sm:$0xff] (!%p287_p12)  ;;  %904 = vset.pattern.permute.xlu0 (!%p287_p12), %v977_v6  ;;  %v331_v9 = vld [vmem:[%s1200_s2 + $0x8] sm:$0xff] (!%p287_p12)  ;;  %v333_v10 = vld [vmem:[%s1200_s2 + $0x18] sm:$0xff] (!%p287_p12)  ;;  %vm478_vm1 = vcmask (!%p287_p12), 261120  }
  0x22   : > { %s295_s9 = scalar_lea.vmem (!%p287_p12), [#allocation3], %s792_s24  ;;  %905 = vset.pattern.permute.xlu1 (!%p287_p12), %v977_v6  ;;  %336 = vperm.xlu0 (!%p287_p12), %904, %v330_v4   ;;  %v444_v11 = vld [vmem:[%s1202_s4] sm:$0xff] (!%p287_p12)  ;;  %v445_v12 = vld [vmem:[%s1202_s4 + $0x8] sm:$0xff] (!%p287_p12)  ;;  %v446_v13 = vld [vmem:[%s1202_s4 + $0x10] sm:$0xff] (!%p287_p12)  ;;  %v978_v4 = vmov (!%p287_p12), 0.0   ;;  %vm979_vm10 = vmmov (!%p287_p12), 0  }
  0x23   : > { %v906_v5 = vld [vmem:[%s295_s9] sm:$0xff] (!%p287_p12)   ;;  %346 = vperm.xlu1 (!%p287_p12), %905, %v332_v7   ;;  %v447_v14 = vld [vmem:[%s1202_s4 + $0x18] sm:$0xff] (!%p287_p12)  ;;  %v658_v19 = vld [vmem:[#allocation2] sm:$0x1] (!%p287_p12)  ;;  %s815_s19 = sshll.u32 (!%p287_p12), %s785_s6, 4  ;;  %s322_s20 = scalar_lea.vmem (!%p287_p12), [#allocation4], %s1081_s21 }
  0x24   : > { %832 = vmatprep.subr.bf16.mxu0 (!%p287_p12), %v906_v5  ;;  %v806_v15 = vld [vmem:[%s1202_s4 + $0x20] sm:$0xff] (!%p287_p12)  ;;  %v807_v16 = vld [vmem:[%s1202_s4 + $0x28] sm:$0xff] (!%p287_p12)  ;;  %v808_v17 = vld [vmem:[%s1202_s4 + $0x30] sm:$0xff] (!%p287_p12)  ;;  %s725_s22 = sshll.u32 (!%p287_p12), %s322_s20, 4  ;;  %s1154_s25 = scalar_lea.hbm (!%p287_p12), %s1205_s7, %s815_s19  ;;  %s1156_s22 = int_to_ptr.vmem [resolvable:$true] %s725_s22 }
  0x25   : > { %833 = vmatpush3.bf16.msra.mxu0 (!%p287_p12), %v906_v5  ;;  %v809_v18 = vld [vmem:[%s1202_s4 + $0x38] sm:$0xff] (!%p287_p12)  ;;  %v909_v20 = vld [vmem:[%s1201_s3] sm:$0xff] (!%p287_p12)   ;;  %v910_v43 = vld [vmem:[%s1201_s3 + $0x8] sm:$0xff] (!%p287_p12)   ;;  %s713_s6 = scalar_lea.sflag (!%p287_p12), [#allocation5], %s1081_s21  ;;  %s913_s30 = scalar_lea.vmem (!%p287_p12), %s1156_s22, 16 }
  0x26   : > { %341 = vperm.xlu0 (!%p287_p12), %904, %v331_v9   ;;  %842 = vmatprep.mubr.msk.bf16.mxu1 (!%p287_p12), %vm478_vm1, %v909_v20  ;;  %v911_v44 = vld [vmem:[%s1201_s3 + $0x10] sm:$0xff] (!%p287_p12)   ;;  %v912_v3 = vld [vmem:[%s1201_s3 + $0x18] sm:$0xff] (!%p287_p12)   ;;  %p914_p13 = scmp.ne.s32.totalorder (!%p287_p12), %s1156_s22, %s913_s30  ;;  %s980_s9 = smov (!%p287_p12), [#allocation4]  }
  0x27   : > { %351 = vperm.xlu1 (!%p287_p12), %905, %v333_v10   ;;  %s917_s10 = sshll.u32 (!%p287_p12), %s980_s9, 4  ;;  %s918_s10 = int_to_ptr.vmem [resolvable:$false] %s917_s10 }
  0x28   : > { %835 = vmatmul.mubr.msk.bf16.vlgmr.msra.gmra.mrb[0].mxu0 %vm370_vm0, %v908_v8  ;;  %p915_p0 = pnand %p914_p13, %p1062_p6  ;;  %s919_s14 = scalar_lea.vmem %s918_s10, 32 }
  0x29   : > { %850 = vmatprep.mubr.msk.bf16.mxu0 %vm478_vm1, %v911_v44  ;;  %p920_p2 = scmp.lt.s32.totalorder %s1156_s22, %s918_s10  ;;  %p921_p3 = scmp.lt.s32.totalorder %s919_s14, %s913_s30 }
  0x2a   : > { %450 = vperm.xlu0 %904, %v444_v11   ;;  %p916_p1 = pneg %p915_p0 }
  0x2b   : > { %455 = vperm.xlu1 %905, %v445_v12   ;;  %p922_p4 = por %p921_p3, %p920_p2 }
  0x2d   : > { %p923_p5 = pnand %p922_p4, %p916_p1 }
  0x2e   : > { %460 = vperm.xlu0 %904, %v446_v13  }
  0x2f   : > { %465 = vperm.xlu1 %905, %v447_v14  }
  0x32   : > { %560 = vperm.xlu0 %904, %v806_v15  }
  0x33   : > { %565 = vperm.xlu1 %905, %v807_v16  }
  0x36   : > { %570 = vperm.xlu0 %904, %v808_v17  }
  0x37   : > { %575 = vperm.xlu1 %905, %v809_v18  }
  0x3a   : > { %661 = vperm.xlu0 %904, %v658_v19  }
  0xa1   : > { %v337_v22 = vpop.permute.xlu0 %336 }
  0xa2   : > { %v347_v21 = vpop.permute.xlu1 %346 }
  0xa5   : > { %v342_v29 = vpop.permute.xlu0 %341 }
  0xa6   : > { %v352_v26 = vpop.permute.xlu1 %351 }
  0xa9   : > { %v451_v45 = vpop.permute.xlu0 %450 }
  0xaa   : > { %v456_v46 = vpop.permute.xlu1 %455 }
  0xad   : > { %v461_v47 = vpop.permute.xlu0 %460 }
  0xae   : > { %v466_v51 = vpop.permute.xlu1 %465 }
  0xb1   : > { %v561_v5 = vpop.permute.xlu0 %560 }
  0xb2   : > { %v566_v6 = vpop.permute.xlu1 %565 }
  0xb5   : > { %v571_v7 = vpop.permute.xlu0 %570 }
  0xb6   : > { %v576_v11 = vpop.permute.xlu1 %575 }
  0xfb   : > { %v836_v23 = vpop.f32.mrb[0].mxu0 }
  0xfc   : > { %v420_v24 = vadd.f32 %v836_v23, %v347_v21  ;;  %v411_v25 = vpop.f32.mrb[1].mxu0 }
  0xfd   : > { %v412_v27 = vadd.f32 %v411_v25, %v337_v22  ;;  %v837_v28 = vpop.f32.mrb[2].mxu0 }
  0xfe   : > { %v432_v30 = vmul.f32 0.01, %v420_v24  ;;  %v423_v31 = vadd.f32 %v837_v28, %v352_v26  ;;  %v414_v32 = vpop.f32.mrb[3].mxu0  ;;  %vm428_vm2 = vcmp.ge.f32.partialorder %v420_v24, 0.0  ;;  %v664_v28 = vlaneseq }
  0xff   : > { %v430_v33 = vmul.f32 0.01, %v412_v27  ;;  %v415_v34 = vadd.f32 %v414_v32, %v342_v29  ;;  %vm426_vm4 = vcmp.ge.f32.partialorder %v412_v27, 0.0 }
 0x100   : > { %vm429_vm3 = vcmp.ge.f32.partialorder %v423_v31, 0.0  ;;  %v433_v35 = vmul.f32 0.01, %v423_v31  ;;  %v436_v37 = vsel %vm428_vm2, %v420_v24, %v432_v30  ;;  %v665_v29 = vshrl.u32 %v664_v28, 7 }
 0x101   : > { %v431_v36 = vmul.f32 0.01, %v415_v34  ;;  %vm427_vm5 = vcmp.ge.f32.partialorder %v415_v34, 0.0  ;;  %v434_v39 = vsel %vm426_vm4, %v412_v27, %v430_v33  ;;  %v655_v27 = vld [vmem:[%s1203_s5] sm:$0x1] }
 0x102   : > { %v437_v38 = vsel %vm429_vm3, %v423_v31, %v433_v35  ;;  %v666_v30 = vsub.s32 0, %v665_v29  ;;  %v662_v31 = vpop.permute.xlu0 %661 }
 0x103   : > { %v435_v40 = vsel %vm427_vm5, %v415_v34, %v431_v36  ;;  %v443_v41 = vpack.c.bf16 %v437_v38, %v436_v37 }
 0x104   : > { %v442_v42 = vpack.c.bf16 %v435_v40, %v434_v39  ;;  %v667_v32 = vrot.slane %v662_v31, %v666_v30 }
 0x106   : > { %838 = vmatprep.subr.bf16.mxu1 %v442_v42 }
 0x107   : > { %839 = vmatpush3.bf16.msra.mxu1 %v442_v42 }
 0x108   : > { %840 = vmatprep.subr.bf16.mxu1 %v443_v41 }
 0x10b   : > { %841 = vmatpush3.bf16.msra.mxu1 %v443_v41 }
 0x10c   : > { %854 = vmatprep.subr.bf16.mxu1 %v978_v4 }
 0x10e   : > { %843 = vmatmul.mubr.msk.bf16.vlgmr.msra.gmra.mrb[0].mxu1 %vm478_vm1, %v910_v43 }
 0x10f   : > { %858 = vmatprep.mubr.msk.bf16.mxu1 %vm979_vm10, %v978_v4 }
 0x1e1   : > { %v844_v48 = vpop.f32.mrb[0].mxu1 }
 0x1e2   : > { %v528_v49 = vadd.f32 %v844_v48, %v461_v47  ;;  %v519_v50 = vpop.f32.mrb[1].mxu1 }
 0x1e3   : > { %v520_v52 = vadd.f32 %v519_v50, %v451_v45  ;;  %v845_v53 = vpop.f32.mrb[2].mxu1 }
 0x1e4   : > { %v540_v54 = vmul.f32 0.01, %v528_v49  ;;  %v531_v55 = vadd.f32 %v845_v53, %v466_v51  ;;  %v522_v56 = vpop.f32.mrb[3].mxu1  ;;  %vm536_vm6 = vcmp.ge.f32.partialorder %v528_v49, 0.0 }
 0x1e5   : > { %v538_v57 = vmul.f32 0.01, %v520_v52  ;;  %v523_v58 = vadd.f32 %v522_v56, %v456_v46  ;;  %vm534_vm7 = vcmp.ge.f32.partialorder %v520_v52, 0.0 }
 0x1e6   : > { %vm537_vm8 = vcmp.ge.f32.partialorder %v531_v55, 0.0  ;;  %v541_v59 = vmul.f32 0.01, %v531_v55  ;;  %v544_v61 = vsel %vm536_vm6, %v528_v49, %v540_v54 }
 0x1e7   : > { %vm535_vm9 = vcmp.ge.f32.partialorder %v523_v58, 0.0  ;;  %v539_v60 = vmul.f32 0.01, %v523_v58  ;;  %v542_v63 = vsel %vm534_vm7, %v520_v52, %v538_v57 }
 0x1e8   : > { %v545_v62 = vsel %vm537_vm8, %v531_v55, %v541_v59 }
 0x1e9   : > { %v543_v0 = vsel %vm535_vm9, %v523_v58, %v539_v60  ;;  %v552_v1 = vpack.c.bf16 %v545_v62, %v544_v61 }
 0x1ea   : > { %v551_v2 = vpack.c.bf16 %v543_v0, %v542_v63 }
 0x1ec   : > { %846 = vmatprep.subr.bf16.mxu0 %v551_v2 }
 0x1ed   : > { %847 = vmatpush3.bf16.msra.mxu0 %v551_v2 }
 0x1ee   : > { %848 = vmatprep.subr.bf16.mxu0 %v552_v1 }
 0x1f1   : > { %849 = vmatpush3.bf16.msra.mxu0 %v552_v1 }
 0x1f4   : > { %851 = vmatmul.mubr.msk.bf16.vlgmr.msra.gmra.mrb[4].mxu0 %vm478_vm1, %v912_v3 }
 0x2c7   : > { %v852_v8 = vpop.f32.mrb[4].mxu0 }
 0x2c8   : > { %v637_v9 = vadd.f32 %v852_v8, %v571_v7  ;;  %v628_v10 = vpop.f32.mrb[5].mxu0 }
 0x2c9   : > { %v629_v12 = vadd.f32 %v628_v10, %v561_v5  ;;  %v853_v13 = vpop.f32.mrb[6].mxu0 }
 0x2ca   : > { %v649_v14 = vmul.f32 0.01, %v637_v9  ;;  %v640_v15 = vadd.f32 %v853_v13, %v576_v11  ;;  %v631_v16 = vpop.f32.mrb[7].mxu0  ;;  %vm645_vm11 = vcmp.ge.f32.partialorder %v637_v9, 0.0 }
 0x2cb   : > { %v647_v17 = vmul.f32 0.01, %v629_v12  ;;  %v632_v18 = vadd.f32 %v631_v16, %v566_v6  ;;  %vm643_vm12 = vcmp.ge.f32.partialorder %v629_v12, 0.0 }
 0x2cc   : > { %vm646_vm13 = vcmp.ge.f32.partialorder %v640_v15, 0.0  ;;  %v650_v19 = vmul.f32 0.01, %v640_v15  ;;  %v653_v21 = vsel %vm645_vm11, %v637_v9, %v649_v14 }
 0x2cd   : > { %vm644_vm14 = vcmp.ge.f32.partialorder %v632_v18, 0.0  ;;  %v648_v20 = vmul.f32 0.01, %v632_v18  ;;  %v651_v23 = vsel %vm643_vm12, %v629_v12, %v647_v17 }
 0x2ce   : > { %v654_v22 = vsel %vm646_vm13, %v640_v15, %v650_v19 }
 0x2cf   : > { %v657_v24 = vpack.c.bf16 %v654_v22, %v653_v21  ;;  %v652_v25 = vsel %vm644_vm14, %v632_v18, %v648_v20 }
 0x2d0   : > { %v656_v26 = vpack.c.bf16 %v652_v25, %v651_v23 }
 0x2d2   : > { %855 = vmatpush3.bf16.msra.mxu1 %v656_v26 }
 0x2d3   : > { %856 = vmatprep.subr.bf16.mxu1 %v978_v4 }
 0x2d6   : > { %857 = vmatpush3.bf16.msra.mxu1 %v657_v24 }
 0x2d9   : > { %859 = vmatmul.mubr.msk.bf16.vlgmr.msra.gmra.mrb[4].mxu1 %vm478_vm1, %v655_v27 }
 0x3ac   : > { %v705_v33 = vpop.f32.mrb[4].mxu1 }
 0x3ad   : > { %v706_v34 = vadd.f32 %v705_v33, %v667_v32  ;;  %v860_v35 = vpop.f32.mrb[5].mxu1 }
 0x3ae   : > { %v708_v36 = vpop.f32.mrb[6].mxu1 }
 0x3af   : > { %711 = vst [vmem:[%s322_s20] sm:$0x1] %v706_v34  ;;  %v861_v37 = vpop.f32.mrb[7].mxu1 }
 0x3b0   : > { %926 = shalt.err (!%p923_p5)
}
 0x3b1   : > { %s927_s21 = scalar_lea.hbm %s1154_s25, 16  ;;  %s931_s17 = scalar_lea.hbm %s1205_s7, 32 }
 0x3b2   : > { %p928_p7 = scmp.ne.s32.totalorder %s1154_s25, %s927_s21  ;;  %p932_p12 = scmp.lt.u32.totalorder %s1154_s25, %s1205_s7 }
 0x3b3   : > { %p933_p13 = scmp.lt.u32.totalorder %s931_s17, %s927_s21  ;;  %p935_p1 = scmp.lt.u32.totalorder %s927_s21, %s1154_s25 }
 0x3b4   : > { %p929_p10 = pnand %p928_p7, %p1062_p6 }
 0x3b5   : > { %p934_p0 = por %p933_p13, %p932_p12 }
 0x3b6   : > { %p930_p11 = pneg %p929_p10 }
 0x3b7   : > { %p936_p2 = por %p935_p1, %p934_p0 }
 0x3b9   : > { %p937_p3 = pnand %p936_p2, %p930_p11 }
 0x3bb   : > { %940 = shalt.err (!%p937_p3)
}
 0x3bc   : > { %862 = dma.vmem_to_hbm [thread:$0]  (%p1062_p6), %s1156_s22, 16, %s1154_s25, %s713_s6  }
 0x3bd PF: > { %s737_s20 = sand.u32 1, %s963_s26   ;;  %p865_p4 = pnand %p788_p9, %p1066_p8 }
 0x3be   : > { %s738_s23 = scalar_lea.sflag [#allocation5], %s737_s20 }
 0x3bf   : > { %958 = dma.done.wait (!%p865_p4), %s738_s23, 16  }
 0x3c0   : > { %960 = vsyncadd (!%p865_p4), %s738_s23, 4294967280  ;;  %p19_p5 = scmp.ge.s32.totalorder %s1047_s8, 4   ;;  %s1208_s26 = smov %s967_s27 }
 0x3c1   : > { %s1209_s27 = smov %s971_s28  ;;  %s1210_s28 = smov %s1060_s11 }
 0x3c2   : > { %s1211_s29 = smov %s1047_s8  ;;  %21 = sbr.rel (!%p19_p5) target bundleno = 6 (0x6), region = 131 }
 0x3c9   :  { %742 = vsyncpa [#allocation5], 1 }
 0x3ca   :  { %744 = vsyncpa [#allocation5 + $0x1], 1 }

</bundles_post_ra>
